<compile_context>
chip_gen: v5e
topology: v5e:2x2
jax: 0.10.0
libtpu: 0.0.40
codegen_flags: <defaults>
</compile_context>

<pallas_src>
import jax
import jax.numpy as jnp
from jax.experimental import pallas as pl
from jax.experimental.pallas import tpu as pltpu

EMBED_VOCAB = 10
EMBED_DIM = 32
INPUT_DIM = 64    # concat of two 32-dim embeddings
HIDDEN = 64
OUT_DIM = 10


def make_kernel(T, Bp):
    """Build the RNN kernel for a fixed (T, padded-batch) shape."""

    def kernel(x_ref, wih0_ref, whh0_ref, b0_ref, w1_ref, b1_ref,
               wd_ref, bd_ref, out_ref, xp_ref, h1_ref):
        # ---- prologue: hoisted time-parallel layer-0 input projection ----
        # xp[t*Bp + b, :] = x[t, b, :] @ W_ih0^T + (b_ih0 + b_hh0)
        xp_ref[...] = (
            jnp.dot(x_ref[...], wih0_ref[...],
                    preferred_element_type=jnp.float32)
            + b0_ref[...]
        )

        whh0 = whh0_ref[...]                                   # (64, 64)
        w1 = w1_ref[...]                                       # (128, 64)
        b1 = jnp.broadcast_to(b1_ref[...], (Bp, HIDDEN))       # hoisted broadcast

        # ---- serial recurrence over time; h0/h1 live in vregs as carries ----
        def step(t, carry):
            h0_prev, h1_prev = carry
            row = pl.multiple_of(t * Bp, 8)
            x_t = xp_ref[pl.ds(row, Bp), :]                    # (Bp, 64)
            h0 = jnp.tanh(
                x_t + jnp.dot(h0_prev, whh0,
                              preferred_element_type=jnp.float32))
            # fused layer-1: [h0 | h1_prev] @ [W_ih1 ; W_hh1]
            z = jnp.concatenate([h0, h1_prev], axis=1)         # (Bp, 128)
            h1 = jnp.tanh(
                jnp.dot(z, w1, preferred_element_type=jnp.float32) + b1)
            h1_ref[pl.ds(row, Bp), :] = h1                     # stash for the head
            return (h0, h1)

        init = (jnp.zeros((Bp, HIDDEN), jnp.float32),
                jnp.zeros((Bp, HIDDEN), jnp.float32))
        jax.lax.fori_loop(0, T, step, init, unroll=True)

        # ---- epilogue: dense head over all T*Bp rows in one matmul ----
        out_ref[...] = (
            jnp.dot(h1_ref[...], wd_ref[...],
                    preferred_element_type=jnp.float32)
            + bd_ref[...]
        )

    return kernel


def make_params(key):
    ks = jax.random.split(key, 9)
    s = 0.1
    return {
        "embed": jax.random.normal(ks[0], (EMBED_VOCAB, EMBED_DIM), jnp.float32) * s,
        # stored already transposed: (in_features, out_features)
        "wih0": jax.random.normal(ks[1], (INPUT_DIM, HIDDEN), jnp.float32) * s,
        "whh0": jax.random.normal(ks[2], (HIDDEN, HIDDEN), jnp.float32) * s,
        "b0":   jax.random.normal(ks[3], (1, HIDDEN), jnp.float32) * s,   # b_ih0 + b_hh0
        "wih1": jax.random.normal(ks[4], (HIDDEN, HIDDEN), jnp.float32) * s,
        "whh1": jax.random.normal(ks[5], (HIDDEN, HIDDEN), jnp.float32) * s,
        "b1":   jax.random.normal(ks[6], (1, HIDDEN), jnp.float32) * s,   # b_ih1 + b_hh1
        "wd":   jax.random.normal(ks[7], (HIDDEN, OUT_DIM), jnp.float32) * s,
        "bd":   jax.random.normal(ks[8], (1, OUT_DIM), jnp.float32) * s,
    }


def forward(num1, num2, params):
    """num1, num2: int32 (B, T) in [0, 10). Returns (B, T, 10) f32."""
    emb = params["embed"]
    x = jnp.concatenate([emb[num1], emb[num2]], axis=2)      # (B, T, 64)
    B, T, D = x.shape
    Bp = max(8, ((B + 7) // 8) * 8)                          # full f32 sublane tile
    x = jnp.transpose(x, (1, 0, 2))                          # (T, B, 64) time-major
    if Bp != B:
        x = jnp.pad(x, ((0, 0), (0, Bp - B), (0, 0)))        # (T, Bp, 64)
    x2d = x.reshape(T * Bp, D)                               # row index = t*Bp + b

    # stack layer-1 weights once in the wrapper: (2*HIDDEN, HIDDEN)
    w1_stacked = jnp.concatenate([params["wih1"], params["whh1"]], axis=0)

    vmem = pl.BlockSpec(memory_space=pltpu.MemorySpace.VMEM)
    out = pl.pallas_call(
        make_kernel(T, Bp),
        out_shape=jax.ShapeDtypeStruct((T * Bp, OUT_DIM), jnp.float32),
        in_specs=[vmem] * 8,
        out_specs=vmem,
        scratch_shapes=[
            pltpu.VMEM((T * Bp, HIDDEN), jnp.float32),   # hoisted x @ W_ih0 + b0
            pltpu.VMEM((T * Bp, HIDDEN), jnp.float32),   # per-step h1 slab for head
        ],
    )(x2d, params["wih0"], params["whh0"], params["b0"],
      w1_stacked, params["b1"], params["wd"], params["bd"])

    out = out.reshape(T, Bp, OUT_DIM)[:, :B, :]              # drop batch padding
    return jnp.transpose(out, (1, 0, 2))                     # (B, T, 10)


def reference_forward(num1, num2, params):
    """Pure-JAX reference (same math as PyTorch nn.RNN(tanh) + Linear)."""
    emb = params["embed"]
    x = jnp.concatenate([emb[num1], emb[num2]], axis=2)      # (B, T, 64)
    x = jnp.transpose(x, (1, 0, 2))                          # (T, B, 64)
    B = x.shape[1]

    def step(carry, x_t):
        h0, h1 = carry
        h0 = jnp.tanh(x_t @ params["wih0"] + h0 @ params["whh0"] + params["b0"])
        h1 = jnp.tanh(h0 @ params["wih1"] + h1 @ params["whh1"] + params["b1"])
        logits = h1 @ params["wd"] + params["bd"]
        return (h0, h1), logits

    init = (jnp.zeros((B, HIDDEN), jnp.float32), jnp.zeros((B, HIDDEN), jnp.float32))
    _, out = jax.lax.scan(step, init, x)                     # (T, B, 10)
    return jnp.transpose(out, (1, 0, 2))                     # (B, T, 10)


if __name__ == "__main__":
    key = jax.random.PRNGKey(0)
    pkey, k1, k2 = jax.random.split(key, 3)
    params = make_params(pkey)

    B, T = 2, 8
    num1 = jax.random.randint(k1, (B, T), 0, EMBED_VOCAB, dtype=jnp.int32)
    num2 = jax.random.randint(k2, (B, T), 0, EMBED_VOCAB, dtype=jnp.int32)

    logits = jax.block_until_ready(forward(num1, num2, params))
    ref = jax.block_until_ready(reference_forward(num1, num2, params))

    assert logits.shape == (B, T, OUT_DIM), logits.shape
    assert jnp.allclose(logits, ref, atol=1e-4, rtol=1e-4), (
        float(jnp.max(jnp.abs(logits - ref))))

    print("KERNEL_OK")
</pallas_src>

<mosaic_0001>
module attributes {stable_mosaic.version = 11 : i64} {
  func.func @kernel(%arg0: memref<64x64xf32, #tpu.memory_space<vmem>>, %arg1: memref<64x64xf32, #tpu.memory_space<vmem>>, %arg2: memref<64x64xf32, #tpu.memory_space<vmem>>, %arg3: memref<1x64xf32, #tpu.memory_space<vmem>>, %arg4: memref<128x64xf32, #tpu.memory_space<vmem>>, %arg5: memref<1x64xf32, #tpu.memory_space<vmem>>, %arg6: memref<64x10xf32, #tpu.memory_space<vmem>>, %arg7: memref<1x10xf32, #tpu.memory_space<vmem>>, %arg8: memref<64x10xf32, #tpu.memory_space<vmem>>, %arg9: memref<64x64xf32, #tpu.memory_space<vmem>>, %arg10: memref<64x64xf32, #tpu.memory_space<vmem>>) attributes {dimension_semantics = [], scalar_prefetch = 0 : i64, scratch_operands = 2 : i64, tpu.core_type = #tpu.core_type<tc>} {
    %c0 = arith.constant 0 : index
    %c0_0 = arith.constant 0 : index
    %0 = vector.load %arg0[%c0, %c0_0] : memref<64x64xf32, #tpu.memory_space<vmem>>, vector<64x64xf32>
    %c0_1 = arith.constant 0 : index
    %c0_2 = arith.constant 0 : index
    %1 = vector.load %arg1[%c0_1, %c0_2] : memref<64x64xf32, #tpu.memory_space<vmem>>, vector<64x64xf32>
    %cst = arith.constant dense<0.000000e+00> : vector<64x64xf32>
    %2 = tpu.matmul %0, %1, %cst {dimension_numbers = #tpu.dot_dimension_numbers<[1], [0], [0], [1], [0, 0, 1, 1], [], []>} : vector<64x64xf32>, vector<64x64xf32>, vector<64x64xf32> -> vector<64x64xf32>
    %c0_3 = arith.constant 0 : index
    %c0_4 = arith.constant 0 : index
    %3 = vector.load %arg3[%c0_3, %c0_4] : memref<1x64xf32, #tpu.memory_space<vmem>>, vector<1x64xf32>
    %4 = vector.broadcast %3 : vector<1x64xf32> to vector<64x64xf32>
    %5 = arith.addf %2, %4 : vector<64x64xf32>
    %c0_5 = arith.constant 0 : index
    %c0_6 = arith.constant 0 : index
    %6 = vector.load %arg9[%c0_5, %c0_6] : memref<64x64xf32, #tpu.memory_space<vmem>>, vector<64x64xf32>
    tpu.vector_store %arg9[%c0_5, %c0_6], %5 {strides = array<i32>} : memref<64x64xf32, #tpu.memory_space<vmem>>, vector<64x64xf32>,
    %c0_7 = arith.constant 0 : index
    %c0_8 = arith.constant 0 : index
    %7 = vector.load %arg2[%c0_7, %c0_8] : memref<64x64xf32, #tpu.memory_space<vmem>>, vector<64x64xf32>
    %c0_9 = arith.constant 0 : index
    %c0_10 = arith.constant 0 : index
    %8 = vector.load %arg4[%c0_9, %c0_10] : memref<128x64xf32, #tpu.memory_space<vmem>>, vector<128x64xf32>
    %c0_11 = arith.constant 0 : index
    %c0_12 = arith.constant 0 : index
    %9 = vector.load %arg5[%c0_11, %c0_12] : memref<1x64xf32, #tpu.memory_space<vmem>>, vector<1x64xf32>
    %10 = vector.shape_cast %9 : vector<1x64xf32> to vector<1x64xf32>
    %11 = vector.broadcast %10 : vector<1x64xf32> to vector<8x64xf32>
    %cst_13 = arith.constant 0.000000e+00 : f32
    %12 = vector.broadcast %cst_13 : f32 to vector<8x64xf32>
    %cst_14 = arith.constant 0.000000e+00 : f32
    %13 = vector.broadcast %cst_14 : f32 to vector<8x64xf32>
    %c0_i32 = arith.constant 0 : i32
    %c8_i32 = arith.constant 8 : i32
    %14 = arith.muli %c0_i32, %c8_i32 : i32
    %15 = tpu.assume_multiple %14, 8 : i32
    %16 = arith.index_cast %15 : i32 to index
    %c0_15 = arith.constant 0 : index
    %17 = vector.load %arg9[%16, %c0_15] : memref<64x64xf32, #tpu.memory_space<vmem>>, vector<8x64xf32>
    %cst_16 = arith.constant dense<0.000000e+00> : vector<8x64xf32>
    %18 = tpu.matmul %12, %7, %cst_16 {dimension_numbers = #tpu.dot_dimension_numbers<[1], [0], [0], [1], [0, 0, 1, 1], [], []>} : vector<8x64xf32>, vector<64x64xf32>, vector<8x64xf32> -> vector<8x64xf32>
    %19 = arith.addf %17, %18 : vector<8x64xf32>
    %20 = math.tanh %19 : vector<8x64xf32>
    %21 = tpu.concatenate %20, %13 in 1 : vector<8x64xf32>, vector<8x64xf32> -> vector<8x128xf32>
    %cst_17 = arith.constant dense<0.000000e+00> : vector<8x64xf32>
    %22 = tpu.matmul %21, %8, %cst_17 {dimension_numbers = #tpu.dot_dimension_numbers<[1], [0], [0], [1], [0, 0, 1, 1], [], []>} : vector<8x128xf32>, vector<128x64xf32>, vector<8x64xf32> -> vector<8x64xf32>
    %23 = arith.addf %22, %11 : vector<8x64xf32>
    %24 = math.tanh %23 : vector<8x64xf32>
    %25 = arith.index_cast %15 : i32 to index
    %c0_18 = arith.constant 0 : index
    %26 = vector.load %arg10[%25, %c0_18] : memref<64x64xf32, #tpu.memory_space<vmem>>, vector<8x64xf32>
    tpu.vector_store %arg10[%25, %c0_18], %24 {strides = array<i32>} : memref<64x64xf32, #tpu.memory_space<vmem>>, vector<8x64xf32>,
    %c1_i32 = arith.constant 1 : i32
    %c8_i32_19 = arith.constant 8 : i32
    %27 = arith.muli %c1_i32, %c8_i32_19 : i32
    %28 = tpu.assume_multiple %27, 8 : i32
    %29 = arith.index_cast %28 : i32 to index
    %c0_20 = arith.constant 0 : index
    %30 = vector.load %arg9[%29, %c0_20] : memref<64x64xf32, #tpu.memory_space<vmem>>, vector<8x64xf32>
    %cst_21 = arith.constant dense<0.000000e+00> : vector<8x64xf32>
    %31 = tpu.matmul %20, %7, %cst_21 {dimension_numbers = #tpu.dot_dimension_numbers<[1], [0], [0], [1], [0, 0, 1, 1], [], []>} : vector<8x64xf32>, vector<64x64xf32>, vector<8x64xf32> -> vector<8x64xf32>
    %32 = arith.addf %30, %31 : vector<8x64xf32>
    %33 = math.tanh %32 : vector<8x64xf32>
    %34 = tpu.concatenate %33, %24 in 1 : vector<8x64xf32>, vector<8x64xf32> -> vector<8x128xf32>
    %cst_22 = arith.constant dense<0.000000e+00> : vector<8x64xf32>
    %35 = tpu.matmul %34, %8, %cst_22 {dimension_numbers = #tpu.dot_dimension_numbers<[1], [0], [0], [1], [0, 0, 1, 1], [], []>} : vector<8x128xf32>, vector<128x64xf32>, vector<8x64xf32> -> vector<8x64xf32>
    %36 = arith.addf %35, %11 : vector<8x64xf32>
    %37 = math.tanh %36 : vector<8x64xf32>
    %38 = arith.index_cast %28 : i32 to index
    %c0_23 = arith.constant 0 : index
    %39 = vector.load %arg10[%38, %c0_23] : memref<64x64xf32, #tpu.memory_space<vmem>>, vector<8x64xf32>
    tpu.vector_store %arg10[%38, %c0_23], %37 {strides = array<i32>} : memref<64x64xf32, #tpu.memory_space<vmem>>, vector<8x64xf32>,
    %c2_i32 = arith.constant 2 : i32
    %c8_i32_24 = arith.constant 8 : i32
    %40 = arith.muli %c2_i32, %c8_i32_24 : i32
    %41 = tpu.assume_multiple %40, 8 : i32
    %42 = arith.index_cast %41 : i32 to index
    %c0_25 = arith.constant 0 : index
    %43 = vector.load %arg9[%42, %c0_25] : memref<64x64xf32, #tpu.memory_space<vmem>>, vector<8x64xf32>
    %cst_26 = arith.constant dense<0.000000e+00> : vector<8x64xf32>
    %44 = tpu.matmul %33, %7, %cst_26 {dimension_numbers = #tpu.dot_dimension_numbers<[1], [0], [0], [1], [0, 0, 1, 1], [], []>} : vector<8x64xf32>, vector<64x64xf32>, vector<8x64xf32> -> vector<8x64xf32>
    %45 = arith.addf %43, %44 : vector<8x64xf32>
    %46 = math.tanh %45 : vector<8x64xf32>
    %47 = tpu.concatenate %46, %37 in 1 : vector<8x64xf32>, vector<8x64xf32> -> vector<8x128xf32>
    %cst_27 = arith.constant dense<0.000000e+00> : vector<8x64xf32>
    %48 = tpu.matmul %47, %8, %cst_27 {dimension_numbers = #tpu.dot_dimension_numbers<[1], [0], [0], [1], [0, 0, 1, 1], [], []>} : vector<8x128xf32>, vector<128x64xf32>, vector<8x64xf32> -> vector<8x64xf32>
    %49 = arith.addf %48, %11 : vector<8x64xf32>
    %50 = math.tanh %49 : vector<8x64xf32>
    %51 = arith.index_cast %41 : i32 to index
    %c0_28 = arith.constant 0 : index
    %52 = vector.load %arg10[%51, %c0_28] : memref<64x64xf32, #tpu.memory_space<vmem>>, vector<8x64xf32>
    tpu.vector_store %arg10[%51, %c0_28], %50 {strides = array<i32>} : memref<64x64xf32, #tpu.memory_space<vmem>>, vector<8x64xf32>,
    %c3_i32 = arith.constant 3 : i32
    %c8_i32_29 = arith.constant 8 : i32
    %53 = arith.muli %c3_i32, %c8_i32_29 : i32
    %54 = tpu.assume_multiple %53, 8 : i32
    %55 = arith.index_cast %54 : i32 to index
    %c0_30 = arith.constant 0 : index
    %56 = vector.load %arg9[%55, %c0_30] : memref<64x64xf32, #tpu.memory_space<vmem>>, vector<8x64xf32>
    %cst_31 = arith.constant dense<0.000000e+00> : vector<8x64xf32>
    %57 = tpu.matmul %46, %7, %cst_31 {dimension_numbers = #tpu.dot_dimension_numbers<[1], [0], [0], [1], [0, 0, 1, 1], [], []>} : vector<8x64xf32>, vector<64x64xf32>, vector<8x64xf32> -> vector<8x64xf32>
    %58 = arith.addf %56, %57 : vector<8x64xf32>
    %59 = math.tanh %58 : vector<8x64xf32>
    %60 = tpu.concatenate %59, %50 in 1 : vector<8x64xf32>, vector<8x64xf32> -> vector<8x128xf32>
    %cst_32 = arith.constant dense<0.000000e+00> : vector<8x64xf32>
    %61 = tpu.matmul %60, %8, %cst_32 {dimension_numbers = #tpu.dot_dimension_numbers<[1], [0], [0], [1], [0, 0, 1, 1], [], []>} : vector<8x128xf32>, vector<128x64xf32>, vector<8x64xf32> -> vector<8x64xf32>
    %62 = arith.addf %61, %11 : vector<8x64xf32>
    %63 = math.tanh %62 : vector<8x64xf32>
    %64 = arith.index_cast %54 : i32 to index
    %c0_33 = arith.constant 0 : index
    %65 = vector.load %arg10[%64, %c0_33] : memref<64x64xf32, #tpu.memory_space<vmem>>, vector<8x64xf32>
    tpu.vector_store %arg10[%64, %c0_33], %63 {strides = array<i32>} : memref<64x64xf32, #tpu.memory_space<vmem>>, vector<8x64xf32>,
    %c4_i32 = arith.constant 4 : i32
    %c8_i32_34 = arith.constant 8 : i32
    %66 = arith.muli %c4_i32, %c8_i32_34 : i32
    %67 = tpu.assume_multiple %66, 8 : i32
    %68 = arith.index_cast %67 : i32 to index
    %c0_35 = arith.constant 0 : index
    %69 = vector.load %arg9[%68, %c0_35] : memref<64x64xf32, #tpu.memory_space<vmem>>, vector<8x64xf32>
    %cst_36 = arith.constant dense<0.000000e+00> : vector<8x64xf32>
    %70 = tpu.matmul %59, %7, %cst_36 {dimension_numbers = #tpu.dot_dimension_numbers<[1], [0], [0], [1], [0, 0, 1, 1], [], []>} : vector<8x64xf32>, vector<64x64xf32>, vector<8x64xf32> -> vector<8x64xf32>
    %71 = arith.addf %69, %70 : vector<8x64xf32>
    %72 = math.tanh %71 : vector<8x64xf32>
    %73 = tpu.concatenate %72, %63 in 1 : vector<8x64xf32>, vector<8x64xf32> -> vector<8x128xf32>
    %cst_37 = arith.constant dense<0.000000e+00> : vector<8x64xf32>
    %74 = tpu.matmul %73, %8, %cst_37 {dimension_numbers = #tpu.dot_dimension_numbers<[1], [0], [0], [1], [0, 0, 1, 1], [], []>} : vector<8x128xf32>, vector<128x64xf32>, vector<8x64xf32> -> vector<8x64xf32>
    %75 = arith.addf %74, %11 : vector<8x64xf32>
    %76 = math.tanh %75 : vector<8x64xf32>
    %77 = arith.index_cast %67 : i32 to index
    %c0_38 = arith.constant 0 : index
    %78 = vector.load %arg10[%77, %c0_38] : memref<64x64xf32, #tpu.memory_space<vmem>>, vector<8x64xf32>
    tpu.vector_store %arg10[%77, %c0_38], %76 {strides = array<i32>} : memref<64x64xf32, #tpu.memory_space<vmem>>, vector<8x64xf32>,
    %c5_i32 = arith.constant 5 : i32
    %c8_i32_39 = arith.constant 8 : i32
    %79 = arith.muli %c5_i32, %c8_i32_39 : i32
    %80 = tpu.assume_multiple %79, 8 : i32
    %81 = arith.index_cast %80 : i32 to index
    %c0_40 = arith.constant 0 : index
    %82 = vector.load %arg9[%81, %c0_40] : memref<64x64xf32, #tpu.memory_space<vmem>>, vector<8x64xf32>
    %cst_41 = arith.constant dense<0.000000e+00> : vector<8x64xf32>
    %83 = tpu.matmul %72, %7, %cst_41 {dimension_numbers = #tpu.dot_dimension_numbers<[1], [0], [0], [1], [0, 0, 1, 1], [], []>} : vector<8x64xf32>, vector<64x64xf32>, vector<8x64xf32> -> vector<8x64xf32>
    %84 = arith.addf %82, %83 : vector<8x64xf32>
    %85 = math.tanh %84 : vector<8x64xf32>
    %86 = tpu.concatenate %85, %76 in 1 : vector<8x64xf32>, vector<8x64xf32> -> vector<8x128xf32>
    %cst_42 = arith.constant dense<0.000000e+00> : vector<8x64xf32>
    %87 = tpu.matmul %86, %8, %cst_42 {dimension_numbers = #tpu.dot_dimension_numbers<[1], [0], [0], [1], [0, 0, 1, 1], [], []>} : vector<8x128xf32>, vector<128x64xf32>, vector<8x64xf32> -> vector<8x64xf32>
    %88 = arith.addf %87, %11 : vector<8x64xf32>
    %89 = math.tanh %88 : vector<8x64xf32>
    %90 = arith.index_cast %80 : i32 to index
    %c0_43 = arith.constant 0 : index
    %91 = vector.load %arg10[%90, %c0_43] : memref<64x64xf32, #tpu.memory_space<vmem>>, vector<8x64xf32>
    tpu.vector_store %arg10[%90, %c0_43], %89 {strides = array<i32>} : memref<64x64xf32, #tpu.memory_space<vmem>>, vector<8x64xf32>,
    %c6_i32 = arith.constant 6 : i32
    %c8_i32_44 = arith.constant 8 : i32
    %92 = arith.muli %c6_i32, %c8_i32_44 : i32
    %93 = tpu.assume_multiple %92, 8 : i32
    %94 = arith.index_cast %93 : i32 to index
    %c0_45 = arith.constant 0 : index
    %95 = vector.load %arg9[%94, %c0_45] : memref<64x64xf32, #tpu.memory_space<vmem>>, vector<8x64xf32>
    %cst_46 = arith.constant dense<0.000000e+00> : vector<8x64xf32>
    %96 = tpu.matmul %85, %7, %cst_46 {dimension_numbers = #tpu.dot_dimension_numbers<[1], [0], [0], [1], [0, 0, 1, 1], [], []>} : vector<8x64xf32>, vector<64x64xf32>, vector<8x64xf32> -> vector<8x64xf32>
    %97 = arith.addf %95, %96 : vector<8x64xf32>
    %98 = math.tanh %97 : vector<8x64xf32>
    %99 = tpu.concatenate %98, %89 in 1 : vector<8x64xf32>, vector<8x64xf32> -> vector<8x128xf32>
    %cst_47 = arith.constant dense<0.000000e+00> : vector<8x64xf32>
    %100 = tpu.matmul %99, %8, %cst_47 {dimension_numbers = #tpu.dot_dimension_numbers<[1], [0], [0], [1], [0, 0, 1, 1], [], []>} : vector<8x128xf32>, vector<128x64xf32>, vector<8x64xf32> -> vector<8x64xf32>
    %101 = arith.addf %100, %11 : vector<8x64xf32>
    %102 = math.tanh %101 : vector<8x64xf32>
    %103 = arith.index_cast %93 : i32 to index
    %c0_48 = arith.constant 0 : index
    %104 = vector.load %arg10[%103, %c0_48] : memref<64x64xf32, #tpu.memory_space<vmem>>, vector<8x64xf32>
    tpu.vector_store %arg10[%103, %c0_48], %102 {strides = array<i32>} : memref<64x64xf32, #tpu.memory_space<vmem>>, vector<8x64xf32>,
    %c7_i32 = arith.constant 7 : i32
    %c8_i32_49 = arith.constant 8 : i32
    %105 = arith.muli %c7_i32, %c8_i32_49 : i32
    %106 = tpu.assume_multiple %105, 8 : i32
    %107 = arith.index_cast %106 : i32 to index
    %c0_50 = arith.constant 0 : index
    %108 = vector.load %arg9[%107, %c0_50] : memref<64x64xf32, #tpu.memory_space<vmem>>, vector<8x64xf32>
    %cst_51 = arith.constant dense<0.000000e+00> : vector<8x64xf32>
    %109 = tpu.matmul %98, %7, %cst_51 {dimension_numbers = #tpu.dot_dimension_numbers<[1], [0], [0], [1], [0, 0, 1, 1], [], []>} : vector<8x64xf32>, vector<64x64xf32>, vector<8x64xf32> -> vector<8x64xf32>
    %110 = arith.addf %108, %109 : vector<8x64xf32>
    %111 = math.tanh %110 : vector<8x64xf32>
    %112 = tpu.concatenate %111, %102 in 1 : vector<8x64xf32>, vector<8x64xf32> -> vector<8x128xf32>
    %cst_52 = arith.constant dense<0.000000e+00> : vector<8x64xf32>
    %113 = tpu.matmul %112, %8, %cst_52 {dimension_numbers = #tpu.dot_dimension_numbers<[1], [0], [0], [1], [0, 0, 1, 1], [], []>} : vector<8x128xf32>, vector<128x64xf32>, vector<8x64xf32> -> vector<8x64xf32>
    %114 = arith.addf %113, %11 : vector<8x64xf32>
    %115 = math.tanh %114 : vector<8x64xf32>
    %116 = arith.index_cast %106 : i32 to index
    %c0_53 = arith.constant 0 : index
    %117 = vector.load %arg10[%116, %c0_53] : memref<64x64xf32, #tpu.memory_space<vmem>>, vector<8x64xf32>
    tpu.vector_store %arg10[%116, %c0_53], %115 {strides = array<i32>} : memref<64x64xf32, #tpu.memory_space<vmem>>, vector<8x64xf32>,
    %c8_i32_54 = arith.constant 8 : i32
    %c0_55 = arith.constant 0 : index
    %c0_56 = arith.constant 0 : index
    %118 = vector.load %arg10[%c0_55, %c0_56] : memref<64x64xf32, #tpu.memory_space<vmem>>, vector<64x64xf32>
    %c0_57 = arith.constant 0 : index
    %c0_58 = arith.constant 0 : index
    %119 = vector.load %arg6[%c0_57, %c0_58] : memref<64x10xf32, #tpu.memory_space<vmem>>, vector<64x10xf32>
    %cst_59 = arith.constant dense<0.000000e+00> : vector<64x10xf32>
    %120 = tpu.matmul %118, %119, %cst_59 {dimension_numbers = #tpu.dot_dimension_numbers<[1], [0], [0], [1], [0, 0, 1, 1], [], []>} : vector<64x64xf32>, vector<64x10xf32>, vector<64x10xf32> -> vector<64x10xf32>
    %c0_60 = arith.constant 0 : index
    %c0_61 = arith.constant 0 : index
    %121 = vector.load %arg7[%c0_60, %c0_61] : memref<1x10xf32, #tpu.memory_space<vmem>>, vector<1x10xf32>
    %122 = vector.broadcast %121 : vector<1x10xf32> to vector<64x10xf32>
    %123 = arith.addf %120, %122 : vector<64x10xf32>
    %c0_62 = arith.constant 0 : index
    %c0_63 = arith.constant 0 : index
    %124 = vector.load %arg8[%c0_62, %c0_63] : memref<64x10xf32, #tpu.memory_space<vmem>>, vector<64x10xf32>
    tpu.vector_store %arg8[%c0_62, %c0_63], %123 {strides = array<i32>} : memref<64x10xf32, #tpu.memory_space<vmem>>, vector<64x10xf32>,
    return
  }
}

</mosaic_0001>

<bundles_post_ra>
// kernel: tpu_custom_call.1
= control target key start
LH: loop header
LB: loop body
LE: loop exit
PB: predicated region body
PF: predicated region fallthrough
CT: control target
= control target key end

     0   :  { %vm49_vm0 = vcmask 523264   ;;  %v752_v25 = vmov 0.0   ;;  %vm670_vm1 = vcmask 80896   ;;  %s1306_s1 = inlined_call_operand.vmem [shape: f32[64,64], index: 1, kind: input, shape index: {}]   ;;  %s1307_s2 = inlined_call_operand.vmem [shape: f32[64,64], index: 2, kind: input, shape index: {}]   ;;  %s1308_s4 = inlined_call_operand.vmem [shape: f32[128,64], index: 4, kind: input, shape index: {}]   ;;  %s1309_s3 = inlined_call_operand.vmem [shape: f32[1,64], index: 3, kind: input, shape index: {}]   ;;  %s1310_s0 = inlined_call_operand.vmem [shape: f32[64,64], index: 0, kind: input, shape index: {}]   ;;  %s1311_s5 = inlined_call_operand.vmem [shape: f32[1,64], index: 5, kind: input, shape index: {}]   ;;  %s1312_s6 = inlined_call_operand.vmem [shape: f32[64,10], index: 6, kind: input, shape index: {}]   ;;  %s1313_s7 = inlined_call_operand.vmem [shape: f32[1,10], index: 7, kind: input, shape index: {}]   ;;  %s1314_s8 = inlined_call_operand.vmem [shape: f32[64,10], index: 8, kind: output, shape index: {}]  }
   0x1   :  { %v44_v0 = vld [vmem:[%s1306_s1 + $0x38] sm:$0xff]  ;;  %v43_v1 = vld [vmem:[%s1306_s1 + $0x30] sm:$0xff]  ;;  %v42_v2 = vld [vmem:[%s1306_s1 + $0x28] sm:$0xff] }
   0x2   :  { %82 = vmatpush.msra.mxu0 %v44_v0  ;;  %v811_v3 = vld [vmem:[%s1307_s2 + $0x38] sm:$0xff]  ;;  %v816_v4 = vld [vmem:[%s1307_s2 + $0x30] sm:$0xff]  ;;  %v41_v5 = vld [vmem:[%s1306_s1 + $0x20] sm:$0xff] }
   0x3   :  { %163 = vmatpush.msra.mxu1 %v811_v3  ;;  %v825_v6 = vld [vmem:[%s1307_s2 + $0x28] sm:$0xff]  ;;  %v831_v7 = vld [vmem:[%s1308_s4 + $0x78] sm:$0xff]  ;;  %v839_v9 = vld [vmem:[%s1307_s2 + $0x20] sm:$0xff] }
   0x4   :  { %83 = vmatpush.msra.mxu0 %v43_v1  ;;  %v40_v8 = vld [vmem:[%s1306_s1 + $0x18] sm:$0xff]  ;;  %178 = vmatpush.msra.mxu3 %v831_v7  ;;  %v845_v10 = vld [vmem:[%s1308_s4 + $0x70] sm:$0xff]  ;;  %v852_v11 = vld [vmem:[%s1308_s4 + $0x68] sm:$0xff] }
   0x5   :  { %164 = vmatpush.msra.mxu1 %v816_v4  ;;  %287 = vmatpush.msra.mxu2 %v831_v7  ;;  %v39_v12 = vld [vmem:[%s1306_s1 + $0x10] sm:$0xff]  ;;  %v860_v13 = vld [vmem:[%s1307_s2 + $0x18] sm:$0xff]  ;;  %v868_v14 = vld [vmem:[%s1308_s4 + $0x60] sm:$0xff] }
   0x6   :  { %84 = vmatpush.msra.mxu0 %v42_v2  ;;  %179 = vmatpush.msra.mxu3 %v845_v10  ;;  %v38_v15 = vld [vmem:[%s1306_s1 + $0x8] sm:$0xff]  ;;  %v876_v16 = vld [vmem:[%s1307_s2 + $0x10] sm:$0xff]  ;;  %v884_v17 = vld [vmem:[%s1308_s4 + $0x58] sm:$0xff] }
   0x7   :  { %165 = vmatpush.msra.mxu1 %v825_v6  ;;  %288 = vmatpush.msra.mxu2 %v845_v10  ;;  %v37_v18 = vld [vmem:[%s1306_s1] sm:$0xff]  ;;  %v892_v19 = vld [vmem:[%s1307_s2 + $0x8] sm:$0xff]  ;;  %v903_v21 = vld [vmem:[%s1308_s4 + $0x50] sm:$0xff] }
   0x8   :  { %85 = vmatpush.msra.mxu0 %v41_v5  ;;  %180 = vmatpush.msra.mxu3 %v852_v11  ;;  %v29_v20 = vld [vmem:[%s1310_s0] sm:$0xff]  ;;  %v916_v23 = vld [vmem:[%s1308_s4 + $0x48] sm:$0xff]  ;;  %v931_v26 = vld [vmem:[%s1308_s4 + $0x38] sm:$0xff] }
   0x9   :  { %166 = vmatpush.msra.mxu1 %v839_v9  ;;  %289 = vmatpush.msra.mxu2 %v852_v11  ;;  %v908_v22 = vld [vmem:[%s1307_s2] sm:$0xff]  ;;  %v959_v27 = vld [vmem:[%s1308_s4 + $0x30] sm:$0xff]  ;;  %v966_v28 = vld [vmem:[%s1308_s4 + $0x28] sm:$0xff]  ;;  %s753_s2 = smov 64  }
   0xa   :  { %86 = vmatpush.msra.mxu0 %v40_v8  ;;  %181 = vmatpush.msra.mxu3 %v868_v14  ;;  %v924_v24 = vld [vmem:[%s1308_s4 + $0x40] sm:$0xff]  ;;  %v980_v30 = vld [vmem:[%s1308_s4 + $0x18] sm:$0xff]  ;;  %v989_v31 = vld [vmem:[%s1308_s4 + $0x10] sm:$0xff] }
   0xb   :  { %167 = vmatpush.msra.mxu1 %v860_v13  ;;  %290 = vmatpush.msra.mxu2 %v868_v14  ;;  %v975_v29 = vld [vmem:[%s1308_s4 + $0x20] sm:$0xff]  ;;  %v1002_v32 = vld [vmem:[%s1308_s4 + $0x8] sm:$0xff]  ;;  %v31_v44 = vld [vmem:[%s1310_s0 + $0x10] sm:$0xff] }
   0xc   :  { %87 = vmatpush.msra.mxu0 %v39_v12  ;;  %182 = vmatpush.msra.mxu3 %v884_v17  ;;  %v1011_v33 = vld [vmem:[%s1308_s4] sm:$0xff]  ;;  %v30_v34 = vld [vmem:[%s1310_s0 + $0x8] sm:$0xff]  ;;  %v32_v55 = vld [vmem:[%s1310_s0 + $0x18] sm:$0xff] }
   0xd   :  { %168 = vmatpush.msra.mxu1 %v876_v16  ;;  %291 = vmatpush.msra.mxu2 %v884_v17  ;;  %v1055_v35 = vld [vmem:[%s1309_s3] ss:$0 sm:$0xff] }
   0xe   :  { %88 = vmatpush.msra.mxu0 %v38_v15  ;;  %183 = vmatpush.msra.mxu3 %v903_v21  ;;  %v1097_v45 = vld [vmem:[%s1311_s5] ss:$0 sm:$0xff] }
   0xf   :  { %169 = vmatpush.msra.mxu1 %v892_v19  ;;  %292 = vmatpush.msra.mxu2 %v903_v21  ;;  %v33_v62 = vld [vmem:[%s1310_s0 + $0x20] sm:$0xff] }
  0x10   :  { %89 = vmatpush.msra.mxu0 %v37_v18  ;;  %184 = vmatpush.msra.mxu3 %v916_v23 }
  0x11   :  { %683 = vmatmul.msk.f32.vlgmr.msra.gmra.mxu0 %vm49_vm0, %v29_v20  ;;  %170 = vmatpush.msra.mxu1 %v908_v22 }
  0x12   :  { %171 = vmatmul.f32.vlgmr.msra.gmra.mxu1 %v752_v25  ;;  %293 = vmatpush.msra.mxu2 %v916_v23 }
  0x13   :  { %232 = vmatpush.msrb.mxu1 %v831_v7  ;;  %185 = vmatpush.msra.mxu3 %v924_v24 }
  0x14   :  { %342 = vmatpush.msrb.mxu0 %v831_v7  ;;  %294 = vmatpush.msra.mxu2 %v924_v24 }
  0x15   :  { %233 = vmatpush.msrb.mxu1 %v845_v10  ;;  %186 = vmatpush.msra.mxu3 %v931_v26 }
  0x16   :  { %343 = vmatpush.msrb.mxu0 %v845_v10  ;;  %295 = vmatpush.msra.mxu2 %v931_v26 }
  0x17   :  { %234 = vmatpush.msrb.mxu1 %v852_v11  ;;  %187 = vmatpush.msra.mxu3 %v959_v27 }
  0x18   :  { %344 = vmatpush.msrb.mxu0 %v852_v11  ;;  %296 = vmatpush.msra.mxu2 %v959_v27 }
  0x19   :  { %235 = vmatpush.msrb.mxu1 %v868_v14  ;;  %188 = vmatpush.msra.mxu3 %v966_v28 }
  0x1a   :  { %345 = vmatpush.msrb.mxu0 %v868_v14  ;;  %297 = vmatpush.msra.mxu2 %v966_v28 }
  0x1b   :  { %236 = vmatpush.msrb.mxu1 %v884_v17  ;;  %189 = vmatpush.msra.mxu3 %v975_v29 }
  0x1c   :  { %346 = vmatpush.msrb.mxu0 %v884_v17  ;;  %298 = vmatpush.msra.mxu2 %v975_v29 }
  0x1d   :  { %237 = vmatpush.msrb.mxu1 %v903_v21  ;;  %190 = vmatpush.msra.mxu3 %v980_v30 }
  0x1e   :  { %347 = vmatpush.msrb.mxu0 %v903_v21  ;;  %299 = vmatpush.msra.mxu2 %v980_v30 }
  0x1f   :  { %238 = vmatpush.msrb.mxu1 %v916_v23  ;;  %191 = vmatpush.msra.mxu3 %v989_v31 }
  0x20   :  { %348 = vmatpush.msrb.mxu0 %v916_v23  ;;  %300 = vmatpush.msra.mxu2 %v989_v31 }
  0x21   :  { %239 = vmatpush.msrb.mxu1 %v924_v24  ;;  %192 = vmatpush.msra.mxu3 %v1002_v32 }
  0x22   :  { %349 = vmatpush.msrb.mxu0 %v924_v24  ;;  %301 = vmatpush.msra.mxu2 %v1002_v32 }
  0x23   :  { %240 = vmatpush.msrb.mxu1 %v931_v26  ;;  %193 = vmatpush.msra.mxu3 %v1011_v33 }
  0x24   :  { %350 = vmatpush.msrb.mxu0 %v931_v26  ;;  %302 = vmatpush.msra.mxu2 %v1011_v33 }
  0x25   :  { %241 = vmatpush.msrb.mxu1 %v959_v27  ;;  %213 = vmatpush.msrb.mxu3 %v811_v3 }
  0x26   :  { %351 = vmatpush.msrb.mxu0 %v959_v27  ;;  %452 = vmatpush.msrb.mxu2 %v831_v7 }
  0x27   :  { %242 = vmatpush.msrb.mxu1 %v966_v28  ;;  %214 = vmatpush.msrb.mxu3 %v816_v4 }
  0x28   :  { %352 = vmatpush.msrb.mxu0 %v966_v28  ;;  %453 = vmatpush.msrb.mxu2 %v845_v10 }
  0x29   :  { %243 = vmatpush.msrb.mxu1 %v975_v29  ;;  %215 = vmatpush.msrb.mxu3 %v825_v6 }
  0x2a   :  { %353 = vmatpush.msrb.mxu0 %v975_v29  ;;  %454 = vmatpush.msrb.mxu2 %v852_v11 }
  0x2b   :  { %244 = vmatpush.msrb.mxu1 %v980_v30  ;;  %216 = vmatpush.msrb.mxu3 %v839_v9 }
  0x2c   :  { %354 = vmatpush.msrb.mxu0 %v980_v30  ;;  %455 = vmatpush.msrb.mxu2 %v868_v14 }
  0x2d   :  { %245 = vmatpush.msrb.mxu1 %v989_v31  ;;  %217 = vmatpush.msrb.mxu3 %v860_v13 }
  0x2e   :  { %355 = vmatpush.msrb.mxu0 %v989_v31  ;;  %456 = vmatpush.msrb.mxu2 %v884_v17 }
  0x2f   :  { %246 = vmatpush.msrb.mxu1 %v1002_v32  ;;  %684 = vmatmul.msk.f32.gmra.mxu0 %vm49_vm0, %v30_v34 }
  0x30   :  { %356 = vmatpush.msrb.mxu0 %v1002_v32  ;;  %218 = vmatpush.msrb.mxu3 %v876_v16 }
  0x31   :  { %247 = vmatpush.msrb.mxu1 %v1011_v33  ;;  %457 = vmatpush.msrb.mxu2 %v903_v21 }
  0x32   :  { %357 = vmatpush.msrb.mxu0 %v1011_v33  ;;  %219 = vmatpush.msrb.mxu3 %v892_v19 }
  0x33   :  { %378 = vmatpush.msra.mxu1 %v811_v3  ;;  %458 = vmatpush.msrb.mxu2 %v916_v23 }
  0x34   :  { %488 = vmatpush.msra.mxu0 %v811_v3  ;;  %220 = vmatpush.msrb.mxu3 %v908_v22 }
  0x35   :  { %379 = vmatpush.msra.mxu1 %v816_v4  ;;  %459 = vmatpush.msrb.mxu2 %v924_v24 }
  0x36   :  { %489 = vmatpush.msra.mxu0 %v816_v4 }
  0x37   :  { %380 = vmatpush.msra.mxu1 %v825_v6  ;;  %460 = vmatpush.msrb.mxu2 %v931_v26 }
  0x38   :  { %490 = vmatpush.msra.mxu0 %v825_v6 }
  0x39   :  { %381 = vmatpush.msra.mxu1 %v839_v9  ;;  %461 = vmatpush.msrb.mxu2 %v959_v27 }
  0x3a   :  { %491 = vmatpush.msra.mxu0 %v839_v9 }
  0x3b   :  { %382 = vmatpush.msra.mxu1 %v860_v13  ;;  %462 = vmatpush.msrb.mxu2 %v966_v28 }
  0x3c   :  { %492 = vmatpush.msra.mxu0 %v860_v13 }
  0x3d   :  { %383 = vmatpush.msra.mxu1 %v876_v16  ;;  %463 = vmatpush.msrb.mxu2 %v975_v29 }
  0x3e   :  { %493 = vmatpush.msra.mxu0 %v876_v16 }
  0x3f   :  { %384 = vmatpush.msra.mxu1 %v892_v19  ;;  %464 = vmatpush.msrb.mxu2 %v980_v30 }
  0x40   :  { %494 = vmatpush.msra.mxu0 %v892_v19 }
  0x41   :  { %385 = vmatpush.msra.mxu1 %v908_v22  ;;  %465 = vmatpush.msrb.mxu2 %v989_v31 }
  0x42   :  { %495 = vmatpush.msra.mxu0 %v908_v22 }
  0x43   :  { %466 = vmatpush.msrb.mxu2 %v1002_v32  ;;  %685 = vmatmul.msk.f32.gmra.mxu0 %vm49_vm0, %v31_v44 }
  0x45   :  { %467 = vmatpush.msrb.mxu2 %v1011_v33 }
  0x4b   :  { %686 = vmatmul.msk.f32.gmra.mxu0 %vm49_vm0, %v32_v55 }
  0x53   :  { %687 = vmatmul.msk.f32.gmra.mxu0 %vm49_vm0, %v33_v62 }
  0x8e   :  { %v91_v36 = vpop.f32.mrf.mxu0 }
  0x8f   :  { %v92_v37 = vadd.f32 %v1055_v35, %v91_v36  ;;  %v172_v38 = vpop.f32.mrf.mxu1 }
  0x91   :  { %115 = vst.msk [vmem:[#allocation2] sm:$0xff] %vm49_vm0, %v92_v37 }
  0x98   :  { %v151_v39 = vld [vmem:[#allocation2] sm:$0xff] }
  0x99   :  { %v175_v40 = vadd.f32 %v172_v38, %v151_v39  ;;  %v35_v39 = vld [vmem:[%s1310_s0 + $0x30] sm:$0xff] }
  0x9b   :  { %720 = vtanh.f32 %v175_v40  ;;  %v36_v40 = vld [vmem:[%s1310_s0 + $0x38] sm:$0xff] }
  0xa1   :  { %v721_v41 = vpop.eup %720 }
  0xa2   :  { %691 = vmatmul.msk.f32.vlgmr.msra.gmra.mxu3 %vm49_vm0, %v721_v41 }
  0xa3   :  { %268 = vmatpush.msra.mxu3 %v811_v3 }
  0xa5   :  { %269 = vmatpush.msra.mxu3 %v816_v4 }
  0xa7   :  { %270 = vmatpush.msra.mxu3 %v825_v6 }
  0xa9   :  { %271 = vmatpush.msra.mxu3 %v839_v9 }
  0xaa   :  { %692 = vmatmul.msk.f32.vlgmr.msrb.gmra.mxu3 %vm49_vm0, %v721_v41 }
  0xab   :  { %272 = vmatpush.msra.mxu3 %v860_v13 }
  0xac   :  { %v94_v42 = vpop.f32.mrf.mxu0 }
  0xad   :  { %273 = vmatpush.msra.mxu3 %v876_v16  ;;  %v95_v43 = vadd.f32 %v1055_v35, %v94_v42 }
  0xaf   :  { %274 = vmatpush.msra.mxu3 %v892_v19  ;;  %116 = vst.msk [vmem:[#allocation2 + $0x8] sm:$0xff] %vm49_vm0, %v95_v43 }
  0xb1   :  { %275 = vmatpush.msra.mxu3 %v908_v22 }
  0xb3   :  { %323 = vmatpush.msrb.mxu3 %v811_v3 }
  0xb5   :  { %324 = vmatpush.msrb.mxu3 %v816_v4 }
  0xb6   :  { %v201_v48 = vld [vmem:[#allocation2 + $0x8] sm:$0xff] }
  0xb7   :  { %325 = vmatpush.msrb.mxu3 %v825_v6 }
  0xb9   :  { %326 = vmatpush.msrb.mxu3 %v839_v9 }
  0xbb   :  { %327 = vmatpush.msrb.mxu3 %v860_v13 }
  0xbd   :  { %328 = vmatpush.msrb.mxu3 %v876_v16 }
  0xbf   :  { %329 = vmatpush.msrb.mxu3 %v892_v19 }
  0xc0   :  { %v97_v53 = vpop.f32.mrf.mxu0 }
  0xc1   :  { %330 = vmatpush.msrb.mxu3 %v908_v22  ;;  %v98_v54 = vadd.f32 %v1055_v35, %v97_v53  ;;  %v594_v53 = vld [vmem:[%s1312_s6 + $0x8] sm:$0xff] }
  0xc3   :  { %117 = vst.msk [vmem:[#allocation2 + $0x10] sm:$0xff] %vm49_vm0, %v98_v54  ;;  %v593_v54 = vld [vmem:[%s1312_s6] sm:$0xff] }
  0xc8   :  { %v100_v63 = vpop.f32.mrf.mxu0 }
  0xc9   :  { %v101_v0 = vadd.f32 %v1055_v35, %v100_v63  ;;  %v719_v63 = vld [vmem:[%s1313_s7] ss:$0 sm:$0xff] }
  0xca   :  { %v256_v58 = vld [vmem:[#allocation2 + $0x10] sm:$0xff] }
  0xcb   :  { %118 = vst.msk [vmem:[#allocation2 + $0x18] sm:$0xff] %vm49_vm0, %v101_v0 }
  0xd0   :  { %v103_v12 = vpop.f32.mrf.mxu0 }
 0x125   :  { %v195_v46 = vpop.f32.mrf.mxu3 }
 0x126   :  { %v196_v47 = vadd.f32 %v1097_v45, %v195_v46 }
 0x128   :  { %722 = vtanh.f32 %v196_v47 }
 0x12d   :  { %v222_v49 = vpop.f32.mrf.mxu3 }
 0x12e   :  { %v723_v50 = vpop.eup %722  ;;  %v225_v51 = vadd.f32 %v222_v49, %v201_v48 }
 0x12f   :  { %199 = vst.msk [vmem:[#allocation3] sm:$0xff] %vm49_vm0, %v723_v50  ;;  %228 = vrot.lane.b32.xlu0 %v723_v50, %s753_s2  ;;  %v597_v50 = vld [vmem:[%s1312_s6 + $0x20] sm:$0xff] }
 0x130   :  { %724 = vtanh.f32 %v225_v51  ;;  %v596_v51 = vld [vmem:[%s1312_s6 + $0x18] sm:$0xff] }
 0x136   :  { %v725_v52 = vpop.eup %724 }
 0x137   :  { %693 = vmatmul.msk.f32.vlgmr.msra.gmra.mxu3 %vm49_vm0, %v725_v52 }
 0x138   :  { %397 = vmatpush.msra.mxu3 %v831_v7 }
 0x13a   :  { %398 = vmatpush.msra.mxu3 %v845_v10 }
 0x13c   :  { %399 = vmatpush.msra.mxu3 %v852_v11 }
 0x13e   :  { %400 = vmatpush.msra.mxu3 %v868_v14 }
 0x140   :  { %401 = vmatpush.msra.mxu3 %v884_v17 }
 0x142   :  { %402 = vmatpush.msra.mxu3 %v903_v21 }
 0x144   :  { %403 = vmatpush.msra.mxu3 %v916_v23 }
 0x146   :  { %404 = vmatpush.msra.mxu3 %v924_v24 }
 0x148   :  { %405 = vmatpush.msra.mxu3 %v931_v26 }
 0x14a   :  { %406 = vmatpush.msra.mxu3 %v959_v27 }
 0x14c   :  { %407 = vmatpush.msra.mxu3 %v966_v28 }
 0x14e   :  { %408 = vmatpush.msra.mxu3 %v975_v29 }
 0x150   :  { %409 = vmatpush.msra.mxu3 %v980_v30 }
 0x152   :  { %410 = vmatpush.msra.mxu3 %v989_v31 }
 0x154   :  { %411 = vmatpush.msra.mxu3 %v1002_v32 }
 0x156   :  { %412 = vmatpush.msra.mxu3 %v1011_v33 }
 0x1a1   :  { %v229_v56 = vpop.permute.xlu0 %228 }
 0x1a2   :  { %v231_v57 = vsel %vm49_vm0, %v725_v52, %v229_v56  ;;  %v595_v52 = vld [vmem:[%s1312_s6 + $0x10] sm:$0xff] }
 0x1a3   :  { %248 = vmatmul.f32.vlgmr.msrb.gmra.mxu1 %v231_v57 }
 0x1a4   :  { %433 = vmatpush.msrb.mxu1 %v811_v3 }
 0x1a6   :  { %434 = vmatpush.msrb.mxu1 %v816_v4 }
 0x1a8   :  { %435 = vmatpush.msrb.mxu1 %v825_v6 }
 0x1aa   :  { %436 = vmatpush.msrb.mxu1 %v839_v9 }
 0x1ac   :  { %437 = vmatpush.msrb.mxu1 %v860_v13 }
 0x1ae   :  { %438 = vmatpush.msrb.mxu1 %v876_v16 }
 0x1b0   :  { %439 = vmatpush.msrb.mxu1 %v892_v19 }
 0x1b2   :  { %440 = vmatpush.msrb.mxu1 %v908_v22 }
 0x1ba   :  { %v277_v59 = vpop.f32.mrf.mxu3 }
 0x1bb   :  { %v280_v60 = vadd.f32 %v277_v59, %v256_v58 }
 0x1bd   :  { %726 = vtanh.f32 %v280_v60 }
 0x1c3   :  { %v727_v61 = vpop.eup %726 }
 0x1c4   :  { %694 = vmatmul.msk.f32.vlgmr.msrb.gmra.mxu3 %vm49_vm0, %v727_v61 }
 0x1c5   :  { %543 = vmatpush.msrb.mxu3 %v811_v3 }
 0x1c7   :  { %544 = vmatpush.msrb.mxu3 %v816_v4  ;;  %v311_v4 = vld [vmem:[#allocation2 + $0x18] sm:$0xff] }
 0x1c9   :  { %545 = vmatpush.msrb.mxu3 %v825_v6 }
 0x1cb   :  { %546 = vmatpush.msrb.mxu3 %v839_v9  ;;  %v34_v9 = vld [vmem:[%s1310_s0 + $0x28] sm:$0xff] }
 0x1cc   :  { %688 = vmatmul.msk.f32.gmra.mxu0 %vm49_vm0, %v34_v9 }
 0x1cd   :  { %547 = vmatpush.msrb.mxu3 %v860_v13  ;;  %v104_v13 = vadd.f32 %v1055_v35, %v103_v12 }
 0x1cf   :  { %548 = vmatpush.msrb.mxu3 %v876_v16  ;;  %119 = vst.msk [vmem:[#allocation2 + $0x20] sm:$0xff] %vm49_vm0, %v104_v13 }
 0x1d1   :  { %549 = vmatpush.msrb.mxu3 %v892_v19 }
 0x1d3   :  { %550 = vmatpush.msrb.mxu3 %v908_v22 }
 0x1d4   :  { %689 = vmatmul.msk.f32.gmra.mxu0 %vm49_vm0, %v35_v39 }
 0x1d6   :  { %v366_v18 = vld [vmem:[#allocation2 + $0x20] sm:$0xff] }
 0x1dc   :  { %690 = vmatmul.msk.f32.gmra.mxu0 %vm49_vm0, %v36_v40 }
 0x220   :  { %v249_v1 = vpop.f32.mrf.mxu1 }
 0x221   :  { %v250_v2 = vadd.f32 %v1097_v45, %v249_v1 }
 0x223   :  { %728 = vtanh.f32 %v250_v2 }
 0x229   :  { %v729_v3 = vpop.eup %728 }
 0x22a   :  { %254 = vst.msk [vmem:[#allocation3 + $0x8] sm:$0xff] %vm49_vm0, %v729_v3  ;;  %283 = vrot.lane.b32.xlu0 %v729_v3, %s753_s2 }
 0x231   :  { %v586_v57 = vld [vmem:[#allocation3 + $0x8] sm:$0xff] }
 0x247   :  { %v332_v5 = vpop.f32.mrf.mxu3 }
 0x248   :  { %v335_v6 = vadd.f32 %v332_v5, %v311_v4 }
 0x249   :  { %v106_v25 = vpop.f32.mrf.mxu0 }
 0x24a   :  { %730 = vtanh.f32 %v335_v6  ;;  %v107_v34 = vadd.f32 %v1055_v35, %v106_v25 }
 0x24c   :  { %120 = vst.msk [vmem:[#allocation2 + $0x28] sm:$0xff] %vm49_vm0, %v107_v34 }
 0x250   :  { %v731_v8 = vpop.eup %730 }
 0x251   :  { %695 = vmatmul.msk.f32.vlgmr.msra.gmra.mxu1 %vm49_vm0, %v731_v8 }
 0x252   :  { %507 = vmatpush.msra.mxu1 %v831_v7 }
 0x253   :  { %v421_v41 = vld [vmem:[#allocation2 + $0x28] sm:$0xff] }
 0x254   :  { %508 = vmatpush.msra.mxu1 %v845_v10 }
 0x256   :  { %509 = vmatpush.msra.mxu1 %v852_v11 }
 0x258   :  { %510 = vmatpush.msra.mxu1 %v868_v14 }
 0x25a   :  { %511 = vmatpush.msra.mxu1 %v884_v17 }
 0x25c   :  { %512 = vmatpush.msra.mxu1 %v903_v21 }
 0x25e   :  { %513 = vmatpush.msra.mxu1 %v916_v23 }
 0x260   :  { %514 = vmatpush.msra.mxu1 %v924_v24 }
 0x262   :  { %515 = vmatpush.msra.mxu1 %v931_v26 }
 0x264   :  { %516 = vmatpush.msra.mxu1 %v959_v27 }
 0x266   :  { %517 = vmatpush.msra.mxu1 %v966_v28 }
 0x268   :  { %518 = vmatpush.msra.mxu1 %v975_v29 }
 0x26a   :  { %519 = vmatpush.msra.mxu1 %v980_v30 }
 0x26c   :  { %520 = vmatpush.msra.mxu1 %v989_v31 }
 0x26e   :  { %521 = vmatpush.msra.mxu1 %v1002_v32 }
 0x270   :  { %522 = vmatpush.msra.mxu1 %v1011_v33 }
 0x29c   :  { %v284_v15 = vpop.permute.xlu0 %283 }
 0x29d   :  { %v286_v16 = vsel %vm49_vm0, %v727_v61, %v284_v15 }
 0x29e   :  { %303 = vmatmul.f32.vlgmr.msra.gmra.mxu2 %v286_v16  ;;  %v585_v16 = vld [vmem:[#allocation3] sm:$0xff] }
 0x2ce   :  { %v387_v19 = vpop.f32.mrf.mxu1 }
 0x2cf   :  { %v390_v20 = vadd.f32 %v387_v19, %v366_v18 }
 0x2d1   :  { %732 = vtanh.f32 %v390_v20 }
 0x2d7   :  { %v733_v22 = vpop.eup %732 }
 0x2d8   :  { %696 = vmatmul.msk.f32.vlgmr.msrb.gmra.mxu1 %vm49_vm0, %v733_v22 }
 0x321   :  { %v304_v36 = vpop.f32.mrf.mxu2 }
 0x322   :  { %v305_v37 = vadd.f32 %v1097_v45, %v304_v36 }
 0x324   :  { %734 = vtanh.f32 %v305_v37 }
 0x32a   :  { %v735_v38 = vpop.eup %734 }
 0x32b   :  { %309 = vst.msk [vmem:[#allocation3 + $0x10] sm:$0xff] %vm49_vm0, %v735_v38  ;;  %338 = vrot.lane.b32.xlu1 %v735_v38, %s753_s2 }
 0x332   :  { %v587_v58 = vld [vmem:[#allocation3 + $0x10] sm:$0xff] }
 0x355   :  { %v442_v42 = vpop.f32.mrf.mxu1 }
 0x356   :  { %v445_v43 = vadd.f32 %v442_v42, %v421_v41 }
 0x358   :  { %736 = vtanh.f32 %v445_v43 }
 0x35e   :  { %v1194_v47 = vpop.eup %736 }
 0x39d   :  { %v339_v44 = vpop.permute.xlu1 %338 }
 0x39e   :  { %v341_v46 = vsel %vm49_vm0, %v731_v8, %v339_v44 }
 0x39f   :  { %358 = vmatmul.f32.vlgmr.msrb.gmra.mxu0 %v341_v46 }
 0x3a0   :  { %562 = vmatpush.msrb.mxu0 %v831_v7  ;;  %v109_v7 = vpop.f32.mrf.mxu0 }
 0x3a2   :  { %563 = vmatpush.msrb.mxu0 %v845_v10  ;;  %v110_v10 = vadd.f32 %v1055_v35, %v109_v7 }
 0x3a4   :  { %564 = vmatpush.msrb.mxu0 %v852_v11  ;;  %121 = vst.msk [vmem:[#allocation2 + $0x30] sm:$0xff] %vm49_vm0, %v110_v10 }
 0x3a6   :  { %565 = vmatpush.msrb.mxu0 %v868_v14 }
 0x3a7   :  { %697 = vmatmul.msk.f32.vlgmr.msra.gmra.mxu0 %vm49_vm0, %v1194_v47 }
 0x3a8   :  { %566 = vmatpush.msrb.mxu0 %v884_v17  ;;  %v112_v11 = vpop.f32.mrf.mxu0 }
 0x3a9   :  { %v113_v14 = vadd.f32 %v1055_v35, %v112_v11 }
 0x3aa   :  { %567 = vmatpush.msrb.mxu0 %v903_v21 }
 0x3ab   :  { %122 = vst.msk [vmem:[#allocation2 + $0x38] sm:$0xff] %vm49_vm0, %v113_v14 }
 0x3ac   :  { %568 = vmatpush.msrb.mxu0 %v916_v23 }
 0x3ae   :  { %569 = vmatpush.msrb.mxu0 %v924_v24 }
 0x3b0   :  { %570 = vmatpush.msrb.mxu0 %v931_v26  ;;  %v476_v26 = vld [vmem:[#allocation2 + $0x30] sm:$0xff] }
 0x3b2   :  { %571 = vmatpush.msrb.mxu0 %v959_v27  ;;  %v531_v39 = vld [vmem:[#allocation2 + $0x38] sm:$0xff] }
 0x3b4   :  { %572 = vmatpush.msrb.mxu0 %v966_v28 }
 0x3b6   :  { %573 = vmatpush.msrb.mxu0 %v975_v29 }
 0x3b8   :  { %574 = vmatpush.msrb.mxu0 %v980_v30 }
 0x3ba   :  { %575 = vmatpush.msrb.mxu0 %v989_v31  ;;  %v600_v31 = vld [vmem:[%s1312_s6 + $0x38] sm:$0xff] }
 0x3bb   :  { %707 = vmatpush.msra.mxu2 %v600_v31  ;;  %637 = vmatpush.msrb.mxu1 %v600_v31 }
 0x3bc   :  { %576 = vmatpush.msrb.mxu0 %v1002_v32  ;;  %v599_v32 = vld [vmem:[%s1312_s6 + $0x30] sm:$0xff] }
 0x3bd   :  { %708 = vmatpush.msra.mxu2 %v599_v32  ;;  %638 = vmatpush.msrb.mxu1 %v599_v32 }
 0x3be   :  { %577 = vmatpush.msrb.mxu0 %v1011_v33  ;;  %v598_v33 = vld [vmem:[%s1312_s6 + $0x28] sm:$0xff] }
 0x3bf   :  { %709 = vmatpush.msra.mxu2 %v598_v33  ;;  %639 = vmatpush.msrb.mxu1 %v598_v33 }
 0x3c1   :  { %710 = vmatpush.msra.mxu2 %v597_v50  ;;  %640 = vmatpush.msrb.mxu1 %v597_v50 }
 0x3c3   :  { %711 = vmatpush.msra.mxu2 %v596_v51  ;;  %641 = vmatpush.msrb.mxu1 %v596_v51 }
 0x3c5   :  { %712 = vmatpush.msra.mxu2 %v595_v52  ;;  %642 = vmatpush.msrb.mxu1 %v595_v52 }
 0x3c7   :  { %713 = vmatpush.msra.mxu2 %v594_v53  ;;  %643 = vmatpush.msrb.mxu1 %v594_v53 }
 0x3c9   :  { %714 = vmatpush.msra.mxu2 %v593_v54  ;;  %644 = vmatpush.msrb.mxu1 %v593_v54 }
 0x41c   :  { %v359_v17 = vpop.f32.mrf.mxu0 }
 0x41d   :  { %v360_v21 = vadd.f32 %v1097_v45, %v359_v17 }
 0x41f   :  { %738 = vtanh.f32 %v360_v21 }
 0x424   :  { %v497_v24 = vpop.f32.mrf.mxu0 }
 0x425   :  { %v739_v23 = vpop.eup %738  ;;  %v500_v27 = vadd.f32 %v497_v24, %v476_v26 }
 0x426   :  { %364 = vst.msk [vmem:[#allocation3 + $0x18] sm:$0xff] %vm49_vm0, %v739_v23  ;;  %393 = vrot.lane.b32.xlu1 %v739_v23, %s753_s2 }
 0x427   :  { %740 = vtanh.f32 %v500_v27 }
 0x42d   :  { %v1219_v30 = vpop.eup %740  ;;  %v588_v59 = vld [vmem:[#allocation3 + $0x18] sm:$0xff] }
 0x498   :  { %v394_v28 = vpop.permute.xlu1 %393 }
 0x499   :  { %v396_v29 = vsel %vm49_vm0, %v733_v22, %v394_v28 }
 0x49a   :  { %413 = vmatmul.f32.vlgmr.msra.gmra.mxu3 %v396_v29 }
 0x4a2   :  { %698 = vmatmul.msk.f32.vlgmr.msrb.gmra.mxu3 %vm49_vm0, %v1219_v30 }
 0x51d   :  { %v414_v35 = vpop.f32.mrf.mxu3 }
 0x51e   :  { %v415_v48 = vadd.f32 %v1097_v45, %v414_v35 }
 0x520   :  { %742 = vtanh.f32 %v415_v48 }
 0x525   :  { %v552_v38 = vpop.f32.mrf.mxu3 }
 0x526   :  { %v743_v49 = vpop.eup %742  ;;  %v555_v40 = vadd.f32 %v552_v38, %v531_v39 }
 0x527   :  { %419 = vst.msk [vmem:[#allocation3 + $0x20] sm:$0xff] %vm49_vm0, %v743_v49  ;;  %448 = vrot.lane.b32.xlu2 %v743_v49, %s753_s2 }
 0x52e   :  { %v589_v60 = vld [vmem:[#allocation3 + $0x20] sm:$0xff] }
 0x581   :  { %v449_v55 = vpop.permute.xlu2 %448 }
 0x582   :  { %v451_v56 = vsel %vm49_vm0, %v1194_v47, %v449_v55 }
 0x583   :  { %468 = vmatmul.f32.vlgmr.msrb.gmra.mxu2 %v451_v56 }
 0x58b   :  { %700 = vmatmul.msk.f32.vlgmr.msra.gmra.mxu2 %vm49_vm0, %v586_v57 }
 0x593   :  { %701 = vmatmul.msk.f32.gmra.mxu2 %vm49_vm0, %v587_v58 }
 0x59b   :  { %702 = vmatmul.msk.f32.gmra.mxu2 %vm49_vm0, %v588_v59 }
 0x5a3   :  { %703 = vmatmul.msk.f32.gmra.mxu2 %vm49_vm0, %v589_v60 }
 0x606   :  { %v469_v61 = vpop.f32.mrf.mxu2 }
 0x607   :  { %v470_v62 = vadd.f32 %v1097_v45, %v469_v61 }
 0x609   :  { %744 = vtanh.f32 %v470_v62 }
 0x60e   :  { %v649_v0 = vpop.f32.mrf.mxu2 }
 0x60f   :  { %v745_v1 = vpop.eup %744  ;;  %v650_v2 = vadd.f32 %v719_v63, %v649_v0 }
 0x610   :  { %474 = vst.msk [vmem:[#allocation3 + $0x28] sm:$0xff] %vm49_vm0, %v745_v1  ;;  %503 = vrot.lane.b32.xlu2 %v745_v1, %s753_s2 }
 0x611   :  { %672 = vst.msk [vmem:[%s1314_s8 + $0x8] sm:$0xff] %vm670_vm1, %v650_v2 }
 0x616   :  { %v652_v3 = vpop.f32.mrf.mxu2 }
 0x617   :  { %v653_v4 = vadd.f32 %v719_v63, %v652_v3  ;;  %v590_v5 = vld [vmem:[#allocation3 + $0x28] sm:$0xff] }
 0x618   :  { %704 = vmatmul.msk.f32.gmra.mxu2 %vm49_vm0, %v590_v5 }
 0x619   :  { %673 = vst.msk [vmem:[%s1314_s8 + $0x10] sm:$0xff] %vm670_vm1, %v653_v4 }
 0x61e   :  { %v655_v6 = vpop.f32.mrf.mxu2 }
 0x61f   :  { %v656_v8 = vadd.f32 %v719_v63, %v655_v6 }
 0x621   :  { %674 = vst.msk [vmem:[%s1314_s8 + $0x18] sm:$0xff] %vm670_vm1, %v656_v8 }
 0x626   :  { %v658_v9 = vpop.f32.mrf.mxu2 }
 0x627   :  { %v659_v12 = vadd.f32 %v719_v63, %v658_v9 }
 0x629   :  { %675 = vst.msk [vmem:[%s1314_s8 + $0x20] sm:$0xff] %vm670_vm1, %v659_v12 }
 0x66a   :  { %v504_v13 = vpop.permute.xlu2 %503 }
 0x66b   :  { %v506_v15 = vsel %vm49_vm0, %v1219_v30, %v504_v13 }
 0x66c   :  { %523 = vmatmul.f32.vlgmr.msra.gmra.mxu1 %v506_v15 }
 0x674   :  { %699 = vmatmul.msk.f32.vlgmr.msrb.gmra.mxu1 %vm49_vm0, %v585_v16 }
 0x69b   :  { %v661_v18 = vpop.f32.mrf.mxu2 }
 0x69c   :  { %v662_v19 = vadd.f32 %v719_v63, %v661_v18 }
 0x69e   :  { %676 = vst.msk [vmem:[%s1314_s8 + $0x28] sm:$0xff] %vm670_vm1, %v662_v19 }
 0x6e9   :  { %v524_v20 = vpop.f32.mrf.mxu1 }
 0x6ea   :  { %v525_v22 = vadd.f32 %v1097_v45, %v524_v20 }
 0x6ec   :  { %746 = vtanh.f32 %v525_v22 }
 0x6ed   :  { %748 = vtanh.f32 %v555_v40 }
 0x6f1   :  { %v646_v25 = vpop.f32.mrf.mxu1 }
 0x6f2   :  { %v747_v34 = vpop.eup %746  ;;  %v647_v36 = vadd.f32 %v719_v63, %v646_v25 }
 0x6f3   :  { %529 = vst.msk [vmem:[#allocation3 + $0x30] sm:$0xff] %vm49_vm0, %v747_v34  ;;  %558 = vrot.lane.b32.xlu0 %v747_v34, %s753_s2  ;;  %v749_v41 = vpop.eup %748 }
 0x6f4   :  { %671 = vst.msk [vmem:[%s1314_s8] sm:$0xff] %vm670_vm1, %v647_v36 }
 0x6fa   :  { %v591_v37 = vld [vmem:[#allocation3 + $0x30] sm:$0xff] }
 0x6fb   :  { %705 = vmatmul.msk.f32.gmra.mxu2 %vm49_vm0, %v591_v37 }
 0x765   :  { %v559_v42 = vpop.permute.xlu0 %558 }
 0x766   :  { %v561_v43 = vsel %vm49_vm0, %v749_v41, %v559_v42 }
 0x767   :  { %578 = vmatmul.f32.vlgmr.msrb.gmra.mxu0 %v561_v43 }
 0x77e   :  { %v664_v44 = vpop.f32.mrf.mxu2 }
 0x77f   :  { %v665_v46 = vadd.f32 %v719_v63, %v664_v44 }
 0x781   :  { %677 = vst.msk [vmem:[%s1314_s8 + $0x30] sm:$0xff] %vm670_vm1, %v665_v46 }
 0x7e4   :  { %v579_v47 = vpop.f32.mrf.mxu0 }
 0x7e5   :  { %v580_v7 = vadd.f32 %v1097_v45, %v579_v47 }
 0x7e7   :  { %750 = vtanh.f32 %v580_v7 }
 0x7ed   :  { %v751_v10 = vpop.eup %750 }
 0x7ee   :  { %584 = vst.msk [vmem:[#allocation3 + $0x38] sm:$0xff] %vm49_vm0, %v751_v10 }
 0x7f5   :  { %v592_v11 = vld [vmem:[#allocation3 + $0x38] sm:$0xff] }
 0x7f6   :  { %706 = vmatmul.msk.f32.gmra.mxu2 %vm49_vm0, %v592_v11 }
 0x879   :  { %v667_v14 = vpop.f32.mrf.mxu2 }
 0x87a   :  { %v668_v17 = vadd.f32 %v719_v63, %v667_v14 }
 0x87c   :  { %678 = vst.msk [vmem:[%s1314_s8 + $0x38] sm:$0xff] %vm670_vm1, %v668_v17 }

</bundles_post_ra>
